<compile_context>
chip_gen: v7x
topology: tpu7x:2x2x1
jax: 0.10.0
libtpu: 0.0.40
codegen_flags: <defaults>
</compile_context>

<pallas_src>
import functools

import jax
import jax.numpy as jnp
from jax import lax
from jax.experimental import pallas as pl
from jax.experimental.pallas import tpu as pltpu

_VMEM_LIMIT = 48 * 1024 * 1024  # fits scoped/physical VMEM on v5e/v6e/v7x


def _round_up(x, m):
    return (x + m - 1) // m * m


def _choose_tm(M):
    """M-tile: big enough to fill the MXU, >=2 tiles when possible (v7x megacore)."""
    if M >= 1024:
        return 256
    if M >= 256:
        return 128
    if M >= 16:
        return _round_up((M + 1) // 2, 8)   # two tiles -> both TensorCores busy
    return _round_up(max(M, 1), 8)


# ----------------------------- Pallas kernels -----------------------------

def _gemm_bias_act_kernel(a_ref, b_ref, bias_ref, o_ref, *, act):
    # a_ref/b_ref are bf16; accumulate in f32 on the MXU; epilogue in f32.
    acc = jnp.dot(a_ref[...], b_ref[...], preferred_element_type=jnp.float32)
    acc = acc + bias_ref[...]
    if act == "relu":
        acc = jnp.maximum(acc, 0.0)
    elif act == "lrelu":
        acc = jnp.where(acc >= 0.0, acc, 0.2 * acc)
    elif act == "tanh":
        acc = jnp.tanh(acc)
    o_ref[...] = acc


@functools.lru_cache(maxsize=None)
def _gemm_call(Mp, Kp, Np, TM, act):
    return pl.pallas_call(
        functools.partial(_gemm_bias_act_kernel, act=act),
        out_shape=jax.ShapeDtypeStruct((Mp, Np), jnp.float32),
        grid=(Mp // TM,),
        in_specs=[
            pl.BlockSpec((TM, Kp), lambda i: (i, 0)),
            pl.BlockSpec((Kp, Np), lambda i: (0, 0)),   # B resident
            pl.BlockSpec((1, Np), lambda i: (0, 0)),
        ],
        out_specs=pl.BlockSpec((TM, Np), lambda i: (i, 0)),
        compiler_params=pltpu.CompilerParams(
            dimension_semantics=("parallel",),
            vmem_limit_bytes=_VMEM_LIMIT,
        ),
    )


def pallas_gemm_bias_act(a, wmat_bf16, bias_f32, act="none"):
    """a: (M, K) f32.  wmat: (Kp, Np) bf16 pre-padded at init.  Returns (M, Np) f32."""
    M, K = a.shape
    Kp, Np = wmat_bf16.shape
    TM = _choose_tm(M)
    Mp = _round_up(M, TM)
    # Single fused pad + cast of the activation matrix only (weights were prepped).
    a_p = jnp.pad(a, ((0, Mp - M), (0, Kp - K))).astype(jnp.bfloat16)
    out = _gemm_call(Mp, Kp, Np, TM, act)(a_p, wmat_bf16, bias_f32)
    return out[:M]


def _norm_nhwc_kernel(*refs, reduce_c, eps, act, has_res, has_affine):
    """Per-sample normalization on a (1, HW, C) block.
    reduce_c=False -> InstanceNorm (mean/var over HW per channel)
    reduce_c=True  -> LayerNorm2d  (mean/var over HW and C)
    Optionally fuses ReLU, per-channel affine (gamma/beta) and a residual add."""
    x_ref, o_ref = refs[0], refs[-1]
    idx = 1
    res_ref = gamma_ref = beta_ref = None
    if has_res:
        res_ref = refs[idx]
        idx += 1
    if has_affine:
        gamma_ref, beta_ref = refs[idx], refs[idx + 1]
        idx += 2

    x = x_ref[...]                                    # (1, HW, C) f32
    axes = (1, 2) if reduce_c else (1,)
    mean = jnp.mean(x, axis=axes, keepdims=True)
    var = jnp.mean(jnp.square(x - mean), axis=axes, keepdims=True)
    y = (x - mean) * lax.rsqrt(var + eps)
    if has_affine:
        c = x.shape[-1]
        y = y * gamma_ref[...].reshape(1, 1, c) + beta_ref[...].reshape(1, 1, c)
    if act == "relu":
        y = jnp.maximum(y, 0.0)
    if has_res:
        y = y + res_ref[...]
    o_ref[...] = y


@functools.lru_cache(maxsize=None)
def _norm_call(N, HW, C, reduce_c, act, has_res, has_affine, eps):
    in_specs = [pl.BlockSpec((1, HW, C), lambda n: (n, 0, 0))]
    if has_res:
        in_specs.append(pl.BlockSpec((1, HW, C), lambda n: (n, 0, 0)))
    if has_affine:
        in_specs.append(pl.BlockSpec((1, C), lambda n: (0, 0)))
        in_specs.append(pl.BlockSpec((1, C), lambda n: (0, 0)))
    return pl.pallas_call(
        functools.partial(_norm_nhwc_kernel, reduce_c=reduce_c, eps=eps, act=act,
                          has_res=has_res, has_affine=has_affine),
        out_shape=jax.ShapeDtypeStruct((N, HW, C), jnp.float32),
        grid=(N,),                                    # per-sample tiles: pipelined + megacore
        in_specs=in_specs,
        out_specs=pl.BlockSpec((1, HW, C), lambda n: (n, 0, 0)),
        compiler_params=pltpu.CompilerParams(
            dimension_semantics=("parallel",),
            vmem_limit_bytes=_VMEM_LIMIT,
        ),
    )


# ----------------------------- JAX glue ops (NHWC) -----------------------------

def reflection_pad(x, p):
    return jnp.pad(x, ((0, 0), (p, p), (p, p), (0, 0)), mode="reflect")


def conv2d(x, cp, stride=1, reflect_pad_amt=0, act="none"):
    """nn.Conv2d (optionally preceded by ReflectionPad2d) via NHWC im2col + Pallas GEMM."""
    if reflect_pad_amt:
        x = reflection_pad(x, reflect_pad_amt)
    N, H, W, C = x.shape
    KH, KW, OC = cp["kh"], cp["kw"], cp["oc"]
    oh = (H - KH) // stride + 1
    ow = (W - KW) // stride + 1
    cols = []
    for i in range(KH):
        for j in range(KW):
            cols.append(x[:, i:i + stride * oh:stride, j:j + stride * ow:stride, :])
    # (N, oh, ow, KH*KW*C) -> (N*oh*ow, K): contiguous, no transpose.
    a = jnp.concatenate(cols, axis=-1).reshape(N * oh * ow, KH * KW * C)
    out = pallas_gemm_bias_act(a, cp["wmat"], cp["bias"], act=act)   # (M, Np) f32
    return out[:, :OC].reshape(N, oh, ow, OC)


def instance_norm(x, act="none", residual=None):
    N, H, W, C = x.shape
    args = [x.reshape(N, H * W, C)]
    if residual is not None:
        args.append(residual.reshape(N, H * W, C))
    y = _norm_call(N, H * W, C, False, act, residual is not None, False, 1e-5)(*args)
    return y.reshape(N, H, W, C)


def layer_norm2d(x, gamma, beta):
    # TODO(synk): LayerNorm2d is not defined in the reference source; this uses
    # MUNIT-style per-sample normalization over (C,H,W) with per-channel affine.
    N, H, W, C = x.shape
    y = _norm_call(N, H * W, C, True, "none", False, True, 1e-5)(
        x.reshape(N, H * W, C), gamma.reshape(1, C), beta.reshape(1, C))
    return y.reshape(N, H, W, C)


def avg_pool_3x3_s2_p1(x):
    # nn.AvgPool2d(3, stride=2, padding=1, count_include_pad=False)
    N, H, W, C = x.shape
    xp = jnp.pad(x, ((0, 0), (1, 1), (1, 1), (0, 0)))
    ones = jnp.pad(jnp.ones((1, H, W, 1), x.dtype), ((0, 0), (1, 1), (1, 1), (0, 0)))
    s = lax.reduce_window(xp, 0.0, lax.add, (1, 3, 3, 1), (1, 2, 2, 1), "VALID")
    cnt = lax.reduce_window(ones, 0.0, lax.add, (1, 3, 3, 1), (1, 2, 2, 1), "VALID")
    return s / cnt


def upsample_nearest_2x(x):
    return jnp.repeat(jnp.repeat(x, 2, axis=1), 2, axis=2)


# ----------------------------- parameters -----------------------------

class KeyGen:
    def __init__(self, key):
        self.key = key
        self.count = 0

    def __call__(self):
        self.count += 1
        return jax.random.fold_in(self.key, self.count)


def spectral_normalize(w, n_iter=5):
    # nn.utils.spectral_norm approximated deterministically at init (power iteration).
    oc = w.shape[0]
    wm = w.reshape(oc, -1)
    u = jnp.ones((oc,), jnp.float32) / jnp.sqrt(float(oc))
    v = wm.T @ u
    for _ in range(n_iter):
        v = wm.T @ u
        v = v / (jnp.linalg.norm(v) + 1e-12)
        u = wm @ v
        u = u / (jnp.linalg.norm(u) + 1e-12)
    sigma = u @ (wm @ v)
    return w / sigma


def conv_init(kg, out_c, in_c, kh, kw, spectral=True):
    """Initialize a conv and pre-pack it for the Pallas GEMM (done ONCE at init)."""
    w = jax.random.normal(kg(), (out_c, in_c, kh, kw), jnp.float32) * 0.1
    b = jax.random.normal(kg(), (out_c,), jnp.float32) * 0.1
    if spectral:
        w = spectral_normalize(w)
    K = kh * kw * in_c
    Kp = _round_up(K, 128)
    Np = _round_up(out_c, 128)
    # NHWC im2col ordering is (kh, kw, ic); match it in the weight matrix.
    wmat = jnp.transpose(w, (2, 3, 1, 0)).reshape(K, out_c)
    wmat = jnp.pad(wmat, ((0, Kp - K), (0, Np - out_c))).astype(jnp.bfloat16)
    bias = jnp.pad(b, (0, Np - out_c)).reshape(1, Np).astype(jnp.float32)
    return {"wmat": wmat, "bias": bias, "oc": out_c, "kh": kh, "kw": kw}


def init_content_encoder(kg, base, n_down, n_res):
    ch = base
    p = {"conv0": conv_init(kg, ch, 3, 7, 7)}
    downs = []
    for _ in range(n_down):
        downs.append(conv_init(kg, 2 * ch, ch, 4, 4))
        ch *= 2
    p["downs"] = downs
    p["res"] = [{"conv1": conv_init(kg, ch, ch, 3, 3),
                 "conv2": conv_init(kg, ch, ch, 3, 3)} for _ in range(n_res)]
    p["out_channels"] = ch
    return p


def init_style_encoder(kg, base, n_down, s_dim, n_deepen=2):
    ch = base
    p = {"conv0": conv_init(kg, ch, 3, 7, 7)}
    deepen = []
    for _ in range(n_deepen):
        deepen.append(conv_init(kg, 2 * ch, ch, 4, 4))
        ch *= 2
    p["deepen"] = deepen
    p["extra"] = [conv_init(kg, ch, ch, 4, 4) for _ in range(n_down - n_deepen)]
    p["final"] = conv_init(kg, s_dim, ch, 1, 1, spectral=False)  # plain nn.Conv2d
    return p


def init_decoder(kg, in_ch, n_up, n_res):
    ch = in_ch
    p = {"res": [{"conv1": conv_init(kg, ch, ch, 3, 3),
                  "conv2": conv_init(kg, ch, ch, 3, 3)} for _ in range(n_res)]}
    ups = []
    for _ in range(n_up):
        ups.append({"conv": conv_init(kg, ch // 2, ch, 5, 5),
                    "ln_gamma": jnp.ones((ch // 2,), jnp.float32),
                    "ln_beta": jnp.zeros((ch // 2,), jnp.float32)})
        ch //= 2
    p["ups"] = ups
    p["final"] = conv_init(kg, 3, ch, 7, 7)
    return p


def init_generator(kg, base, n_c_down, n_s_down, n_res, s_dim):
    c_enc = init_content_encoder(kg, base, n_c_down, n_res)
    s_enc = init_style_encoder(kg, base, n_s_down, s_dim)
    dec = init_decoder(kg, c_enc["out_channels"], n_c_down, n_res)
    return {"c_enc": c_enc, "s_enc": s_enc, "dec": dec}


def init_discriminator(kg, base, n_layers, n_disc):
    discs = []
    for _ in range(n_disc):
        ch = base
        convs = [conv_init(kg, ch, 3, 4, 4)]
        for _ in range(n_layers):
            convs.append(conv_init(kg, 2 * ch, ch, 4, 4))
            ch *= 2
        discs.append({"convs": convs, "final": conv_init(kg, 1, ch, 1, 1)})
    return discs


# ----------------------------- forward passes (NHWC) -----------------------------

def residual_block(p, x):
    h = conv2d(x, p["conv1"], reflect_pad_amt=1)
    h = instance_norm(h, act="relu")
    h = conv2d(h, p["conv2"], reflect_pad_amt=1)
    return instance_norm(h, residual=x)        # norm + residual add fused in one kernel


def content_encoder_fwd(p, x):
    h = conv2d(x, p["conv0"], reflect_pad_amt=3)
    h = instance_norm(h, act="relu")
    for d in p["downs"]:
        h = conv2d(h, d, stride=2, reflect_pad_amt=1)
        h = instance_norm(h, act="relu")
    for r in p["res"]:
        h = residual_block(r, h)
    return h


def style_encoder_fwd(p, x):
    h = conv2d(x, p["conv0"], reflect_pad_amt=3, act="relu")
    for d in p["deepen"]:
        h = conv2d(h, d, stride=2, reflect_pad_amt=1, act="relu")
    for d in p["extra"]:
        h = conv2d(h, d, stride=2, reflect_pad_amt=1, act="relu")
    h = jnp.mean(h, axis=(1, 2), keepdims=True)        # AdaptiveAvgPool2d(1)
    return conv2d(h, p["final"])                        # 1x1 conv -> (N, 1, 1, s_dim)


def decoder_fwd(p, x, s):
    # NOTE: style s is unused: ResidualBlock(channels, s_dim) leaves h_dim=None
    # so use_style=False in the reference module (plain InstanceNorm path).
    del s
    for r in p["res"]:
        x = residual_block(r, x)
    for up in p["ups"]:
        x = upsample_nearest_2x(x)
        x = conv2d(x, up["conv"], reflect_pad_amt=2)
        x = layer_norm2d(x, up["ln_gamma"], up["ln_beta"])
    return conv2d(x, p["final"], reflect_pad_amt=3, act="tanh")


def generator_encode(p, x):
    return content_encoder_fwd(p["c_enc"], x), style_encoder_fwd(p["s_enc"], x)


def generator_decode(p, c, s):
    return decoder_fwd(p["dec"], c, s)


def patchgan_fwd(p, x):
    h = x
    for c in p["convs"]:
        h = conv2d(h, c, stride=2, reflect_pad_amt=1, act="lrelu")
    return conv2d(h, p["final"])


def discriminator_fwd(discs, x):
    outs = []
    for i, d in enumerate(discs):
        outs.append(patchgan_fwd(d, x))
        if i + 1 < len(discs):
            x = avg_pool_3x3_s2_p1(x)
    return outs


# --------------- losses (GinormousCompositeLoss, standard MUNIT) ---------------
# TODO(synk): GinormousCompositeLoss source not provided; reconstructed from the
# standard MUNIT formulation (L1 image/latent reconstruction, LSGAN adversarial).
# The `is_real` flags are passed exactly as in the reference MUNIT.forward.

def l1(a, b):
    return jnp.mean(jnp.abs(a - b))


def adversarial_loss(x, discs, is_real):
    target = 1.0 if is_real else 0.0
    preds = discriminator_fwd(discs, x)
    return sum(jnp.mean(jnp.square(p - target)) for p in preds)


def image_recon_loss(x, gen):
    c, s = generator_encode(gen, x)
    recon = generator_decode(gen, c, s)
    return l1(recon, x), c, s


def latent_recon_loss(c, s, gen):
    x = generator_decode(gen, c, s)
    c_r, s_r = generator_encode(gen, x)
    return l1(c_r, c), l1(s_r, s), x


def munit_forward(params, x_a, x_b, s_a, s_b, scale_loss_weights_to_one=True):
    # Module I/O is NCHW (PyTorch convention); convert once to internal NHWC.
    x_a = jnp.transpose(x_a, (0, 2, 3, 1))
    x_b = jnp.transpose(x_b, (0, 2, 3, 1))
    s_a = jnp.transpose(s_a, (0, 2, 3, 1))
    s_b = jnp.transpose(s_b, (0, 2, 3, 1))

    x_a_loss, c_a, _s_a_fake = image_recon_loss(x_a, params["gen_a"])
    x_b_loss, c_b, _s_b_fake = image_recon_loss(x_b, params["gen_b"])
    c_b_loss, s_a_loss, x_ba = latent_recon_loss(c_b, s_a, params["gen_a"])
    c_a_loss, s_b_loss, x_ab = latent_recon_loss(c_a, s_b, params["gen_b"])
    gen_a_adv = adversarial_loss(x_ba, params["dis_a"], False)
    gen_b_adv = adversarial_loss(x_ab, params["dis_b"], False)
    gen_loss = (10 * x_a_loss + c_b_loss + s_a_loss + gen_a_adv
                + 10 * x_b_loss + c_a_loss + s_b_loss + gen_b_adv)
    if scale_loss_weights_to_one:
        gen_loss = gen_loss * 0.1
    dis_loss = (adversarial_loss(x_ba, params["dis_a"], False)
                + adversarial_loss(x_a, params["dis_a"], True)
                + adversarial_loss(x_ab, params["dis_b"], False)
                + adversarial_loss(x_b, params["dis_b"], True))
    # Convert generated images back to NCHW for the module-level return.
    x_ab = jnp.transpose(x_ab, (0, 3, 1, 2))
    x_ba = jnp.transpose(x_ba, (0, 3, 1, 2))
    return gen_loss, dis_loss, x_ab, x_ba


# ----------------------------- main -----------------------------

if __name__ == "__main__":
    # Reduced hyperparameters (structurally identical to the defaults).
    GEN_CH, DIS_CH = 8, 8
    N_C_DOWN, N_S_DOWN, N_RES = 2, 4, 2
    S_DIM = 8
    N_LAYERS, N_DISC = 2, 2
    B, H, W = 2, 3, 32  # batch, channels, spatial (square)

    kg = KeyGen(jax.random.PRNGKey(0))
    params = {
        "gen_a": init_generator(kg, GEN_CH, N_C_DOWN, N_S_DOWN, N_RES, S_DIM),
        "gen_b": init_generator(kg, GEN_CH, N_C_DOWN, N_S_DOWN, N_RES, S_DIM),
        "dis_a": init_discriminator(kg, DIS_CH, N_LAYERS, N_DISC),
        "dis_b": init_discriminator(kg, DIS_CH, N_LAYERS, N_DISC),
    }

    key = jax.random.PRNGKey(0)
    k1, k2, k3, k4 = jax.random.split(key, 4)
    x_a = jax.random.normal(k1, (B, H, W, W), jnp.float32)  # NCHW: (2, 3, 32, 32)
    x_b = jax.random.normal(k2, (B, H, W, W), jnp.float32)
    # torch.randn(x.size(0), s_dim, 1, 1) drawn deterministically here:
    s_a = jax.random.normal(k3, (B, S_DIM, 1, 1), jnp.float32)
    s_b = jax.random.normal(k4, (B, S_DIM, 1, 1), jnp.float32)

    gen_loss, dis_loss, x_ab, x_ba = munit_forward(params, x_a, x_b, s_a, s_b)
    jax.block_until_ready((gen_loss, dis_loss, x_ab, x_ba))

    assert x_ab.shape == (B, 3, W, W) and x_ba.shape == (B, 3, W, W)
    assert bool(jnp.isfinite(gen_loss)) and bool(jnp.isfinite(dis_loss))
    print("KERNEL_OK")
</pallas_src>

<mosaic_0001>
module attributes {stable_mosaic.version = 11 : i64} {
  func.func @_gemm_bias_act_kernel(%arg0: i32, %arg1: memref<256x256xbf16, #tpu.memory_space<vmem>>, %arg2: memref<256x128xbf16, #tpu.memory_space<vmem>>, %arg3: memref<1x128xf32, #tpu.memory_space<vmem>>, %arg4: memref<256x128xf32, #tpu.memory_space<vmem>>) attributes {dimension_semantics = [#tpu.dimension_semantics<parallel>], iteration_bounds = array<i64: 8>, scalar_prefetch = 0 : i64, scratch_operands = 0 : i64, tpu.core_type = #tpu.core_type<tc>, window_params = [{transform_indices = @transform_0, window_bounds = array<i64: 256, 256>}, {pipeline_mode = #tpu.pipeline_mode<synchronous>, transform_indices = @transform_1, window_bounds = array<i64: 256, 128>}, {pipeline_mode = #tpu.pipeline_mode<synchronous>, transform_indices = @transform_2, window_bounds = array<i64: 1, 128>}, {transform_indices = @transform_3, window_bounds = array<i64: 256, 128>}]} {
    %c0 = arith.constant 0 : index
    %c0_0 = arith.constant 0 : index
    %0 = vector.load %arg1[%c0, %c0_0] : memref<256x256xbf16, #tpu.memory_space<vmem>>, vector<256x256xbf16>
    %c0_1 = arith.constant 0 : index
    %c0_2 = arith.constant 0 : index
    %1 = vector.load %arg2[%c0_1, %c0_2] : memref<256x128xbf16, #tpu.memory_space<vmem>>, vector<256x128xbf16>
    %cst = arith.constant dense<0.000000e+00> : vector<256x128xf32>
    %2 = tpu.matmul %0, %1, %cst {dimension_numbers = #tpu.dot_dimension_numbers<[1], [0], [0], [1], [0, 0, 1, 1], [], []>} : vector<256x256xbf16>, vector<256x128xbf16>, vector<256x128xf32> -> vector<256x128xf32>
    %c0_3 = arith.constant 0 : index
    %c0_4 = arith.constant 0 : index
    %3 = vector.load %arg3[%c0_3, %c0_4] : memref<1x128xf32, #tpu.memory_space<vmem>>, vector<1x128xf32>
    %4 = vector.broadcast %3 : vector<1x128xf32> to vector<256x128xf32>
    %5 = arith.addf %2, %4 : vector<256x128xf32>
    %c0_5 = arith.constant 0 : index
    %c0_6 = arith.constant 0 : index
    %6 = vector.load %arg4[%c0_5, %c0_6] : memref<256x128xf32, #tpu.memory_space<vmem>>, vector<256x128xf32>
    tpu.vector_store %arg4[%c0_5, %c0_6], %5 {strides = array<i32>} : memref<256x128xf32, #tpu.memory_space<vmem>>, vector<256x128xf32>,
    return
  }
  func.func @transform_0(%arg0: i32) -> (i32, i32) {
    %c0_i32 = arith.constant 0 : i32
    %c0_i32_0 = arith.constant 0 : i32
    return %arg0, %c0_i32 : i32, i32
  }
  func.func @transform_1(%arg0: i32) -> (i32, i32) {
    %c0_i32 = arith.constant 0 : i32
    %c0_i32_0 = arith.constant 0 : i32
    %c0_i32_1 = arith.constant 0 : i32
    return %c0_i32, %c0_i32_0 : i32, i32
  }
  func.func @transform_2(%arg0: i32) -> (i32, i32) {
    %c0_i32 = arith.constant 0 : i32
    %c0_i32_0 = arith.constant 0 : i32
    %c0_i32_1 = arith.constant 0 : i32
    return %c0_i32, %c0_i32_0 : i32, i32
  }
  func.func @transform_3(%arg0: i32) -> (i32, i32) {
    %c0_i32 = arith.constant 0 : i32
    %c0_i32_0 = arith.constant 0 : i32
    return %arg0, %c0_i32 : i32, i32
  }
}

</mosaic_0001>

<bundles_post_ra>
// kernel: tpu_custom_call.1
= control target key start
LH: loop header
LB: loop body
LE: loop exit
PB: predicated region body
PF: predicated region fallthrough
CT: control target
= control target key end

     0   :  { %8 = vsyncpa [#allocation3], 0  ;;  %s1610_s0 = inlined_call_operand.hbm [shape: bf16[2048,256], index: 0, kind: input, shape index: {}]   ;;  %s1611_s1 = inlined_call_operand.hbm [shape: bf16[256,128], index: 1, kind: input, shape index: {}]   ;;  %s1612_s2 = inlined_call_operand.vmem [shape: f32[1,128], index: 2, kind: input, shape index: {}]   ;;  %s1613_s3 = inlined_call_operand.hbm [shape: f32[2048,128], index: 3, kind: output, shape index: {}]  }
   0x1   :  { %10 = vsyncpa [#allocation3 + $0x1], 0 }
   0x2   :  { %11 = vsyncpa [#allocation6], 0 }
   0x3   :  { %12 = vsyncpa [#allocation4], 0 }
   0x4   :  { %14 = vsyncpa [#allocation4 + $0x1], 0  ;;  %s1308_s12 = smov 0   ;;  %s1310_s13 = smov 0  }
   0x5   :  { %s1312_s14 = smov 0   ;;  %s1314_s15 = smov 0  }
   0x6 LB: > { %s1329_s16 = sadd.s32 4294967295, %s1277_s15   ;;  %s825_s17 = sadd.s32 4294967294, %s1277_s15   ;;  %s1277_s15 = sphi %s1314_s15, %s1632_s15   ;;  %s1273_s14 = sphi %s1312_s14, %s1631_s14   ;;  %s1269_s13 = sphi %s1310_s13, %s1630_s13   ;;  %s1265_s12 = sphi %s1308_s12, %s1629_s12  }
   0x7   : > { %p40_p0 = scmp.ne.s32.totalorder %s1269_s13, %s1265_s12  ;;  %p1614_p1 = scmp.eq.s32.totalorder %s1329_s16, 0 }
   0x8   : > { %p112_p3 = scmp.eq.s32.totalorder %s825_s17, 7  ;;  %p826_p5 = scmp.ge.s32.totalorder %s1277_s15, 1 }
   0x9   : > { %p1338_p4 = por %p1614_p1, %p40_p0  ;;  %p119_p7 = scmp.lt.s32.totalorder %s1277_s15, 9 }
   0xa   : > { %p1343_p6 = por %p112_p3, %p40_p0  ;;  %s1279_s21 = smov [#allocation5]  }
   0xb   : > { %s1617_s18 = scalar_select %p1338_p4, 1, 0 }
   0xc   : > { %s1618_s19 = scalar_select %p1343_p6, 1, 0 }
   0xd   : > { %p1348_p8 = pnand %p826_p5, %p119_p7  ;;  %s131_s22 = sshll.u32 %s1279_s21, 4  ;;  %s132_s22 = int_to_ptr.vmem [resolvable:$true] %s131_s22 }
   0xe   : > { %s1361_s24 = sadd.s32 1, %s1277_s15   ;;  %s27_s25 = sadd.s32 1, %s1273_s14 }
   0xf   : > { %s1619_s20 = scalar_select %p1348_p8, 1, 0 }
  0x10   : > { %p1030_p9 = pneg %p1348_p8  ;;  %s24_s26 = ssub.s32 %s1277_s15, %s1361_s24 }
  0x11   : > { %s1149_s29 = scalar_lea.hbm %s1611_s1, 2048 }
  0x12   : > { %p1356_p10 = pnand %p1030_p9, %p1614_p1  ;;  %p1150_p11 = scmp.ne.s32.totalorder %s1611_s1, %s1149_s29 }
  0x13   : > { %p1156_p3 = scmp.lt.u32.totalorder %s1149_s29, %s1611_s1 }
  0x14   : > { %p1151_p12 = pneg %p1356_p10 }
  0x16   : > { %p1152_p13 = pnand %p1151_p12, %p1150_p11 }
  0x18   : > { %p1153_p0 = pneg %p1152_p13 }
  0x1a   : > { %p1158_p5 = pnand %p1156_p3, %p1153_p0 }
  0x1c   : > { %1161 = shalt.err (!%p1158_p5)
}
  0x1d   : > { %s1162_s7 = scalar_lea.vmem %s132_s22, 2048  ;;  %p1170_p2 = scmp.lt.s32.totalorder %s132_s22, %s132_s22 }
  0x1e   : > { %p1163_p7 = scmp.ne.s32.totalorder %s132_s22, %s1162_s7  ;;  %p1171_p6 = scmp.lt.s32.totalorder %s1162_s7, %s1162_s7 }
  0x20   : > { %p1165_p9 = pnand %p1163_p7, %p1151_p12  ;;  %p1172_p4 = por %p1171_p6, %p1170_p2 }
  0x22   : > { %p1166_p1 = pneg %p1165_p9 }
  0x24   : > { %p1173_p8 = pnand %p1172_p4, %p1166_p1 }
  0x26   : > { %1176 = shalt.err (!%p1173_p8)
}
  0x27   : > { %s1280_s8 = smov 64   ;;  %s1281_s9 = smov 4  }
  0x28   : > { %1033 = dma.hbm_to_vmem [thread:$0]  (!%p1356_p10), %s1611_s1, 2048, %s132_s22, [#allocation6], %s1280_s8, %s1280_s8, %s1281_s9  }
  0x29   : > { %p25_p11 = scmp.eq.s32.totalorder %s24_s26, 0  ;;  %p34_p2 = scmp.ne.s32.totalorder %s1273_s14, %s1269_s13 }
  0x2a   : > { %p35_p1 = scmp.eq.s32.totalorder %s1277_s15, 0  ;;  %p1043_p4 = scmp.lt.s32.totalorder %s1277_s15, 8 }
  0x2b   : > { %s1387_s17 = scalar_select %p25_p11, %s1273_s14, %s27_s25  }
  0x2c   : > { %p36_p6 = por %p35_p1, %p34_p2  ;;  %p1621_p8 = scmp.eq.s32.totalorder %s1329_s16, 7 }
  0x2d   : > { %s148_s27 = sand.u32 1, %s1273_s14   ;;  %s892_s28 = sshll.u32 %s1277_s15, 12 }
  0x2e   : > { %p1391_p12 = por %p1621_p8, %p34_p2  ;;  %s829_s29 = sshll.u32 %s148_s27, 8 }
  0x2f   : > { %s1400_s4 = scalar_lea.hbm %s1610_s0, %s892_s28  ;;  %s152_s22 = scalar_lea.vmem [#allocation2], %s829_s29 }
  0x30   : > { %s160_s25 = sshll.u32 %s152_s22, 4  ;;  %p1402_p10 = pnand %p1043_p4, %p36_p6  ;;  %s1406_s25 = int_to_ptr.vmem [resolvable:$true] %s160_s25 }
  0x31   : > { %s1408_s5 = scalar_lea.sflag [#allocation3], %s148_s27  ;;  %s1177_s6 = scalar_lea.hbm %s1400_s4, 4096 }
  0x32   : > { %p1178_p13 = scmp.ne.s32.totalorder %s1400_s4, %s1177_s6  ;;  %p1179_p0 = pneg %p1402_p10 }
  0x33   : > { %s1182_s9 = scalar_lea.hbm %s1610_s0, 32768  ;;  %p1183_p7 = scmp.lt.u32.totalorder %s1400_s4, %s1610_s0 }
  0x34   : > { %p1180_p3 = pnand %p1179_p0, %p1178_p13  ;;  %p1184_p9 = scmp.lt.u32.totalorder %s1182_s9, %s1177_s6 }
  0x35   : > { %p1186_p2 = scmp.lt.u32.totalorder %s1177_s6, %s1400_s4 }
  0x36   : > { %p1181_p5 = pneg %p1180_p3  ;;  %p1185_p11 = por %p1184_p9, %p1183_p7 }
  0x38   : > { %p1187_p1 = por %p1186_p2, %p1185_p11 }
  0x3a   : > { %p1188_p4 = pnand %p1187_p1, %p1181_p5 }
  0x3c   : > { %1191 = shalt.err (!%p1188_p4)
}
  0x3d   : > { %s1192_s27 = scalar_lea.vmem %s1406_s25, 4096  ;;  %s1282_s28 = smov [#allocation2]  }
  0x3e   : > { %p1193_p6 = scmp.ne.s32.totalorder %s1406_s25, %s1192_s27  ;;  %s1197_s29 = sshll.u32 %s1282_s28, 4  ;;  %s1198_s29 = int_to_ptr.vmem [resolvable:$false] %s1197_s29 }
  0x3f   : > { %s1199_s23 = scalar_lea.vmem %s1198_s29, 8192  ;;  %p1200_p3 = scmp.lt.s32.totalorder %s1406_s25, %s1198_s29 }
  0x40   : > { %p1195_p8 = pnand %p1193_p6, %p1179_p0  ;;  %p1201_p7 = scmp.lt.s32.totalorder %s1199_s23, %s1192_s27 }
  0x42   : > { %p1196_p13 = pneg %p1195_p8  ;;  %p1202_p9 = por %p1201_p7, %p1200_p3 }
  0x44   : > { %p1203_p11 = pnand %p1202_p9, %p1196_p13 }
  0x46   : > { %1206 = shalt.err (!%p1203_p11)
}
  0x47   : > { %s1283_s30 = smov 128   ;;  %s1284_s22 = smov 8  }
  0x48   : > { %1037 = dma.hbm_to_vmem [thread:$0]  (!%p1402_p10), %s1400_s4, 4096, %s1406_s25, %s1408_s5, %s1283_s30, %s1283_s30, %s1284_s22  }
  0x49   : > { %p1624_p0 = scmp.ne.s32.totalorder %s1619_s20, 0 }
  0x4a   : > { %s1439_s6 = sand.u32 (!%p1624_p0), 1, %s1269_s13   ;;  %p1625_p5 = scmp.ne.s32.totalorder (!%p1624_p0), %s1617_s18, 0 }
  0x4b   : > { %172 = sbr.rel (%p1624_p0) target bundleno = 409 (0x199), region = 32  ;;  %s834_s7 = sshll.u32 (!%p1624_p0), %s1439_s6, 8 }
  0x4c   : > { %s175_s8 = scalar_lea.sflag (!%p1624_p0), [#allocation3], %s1439_s6  ;;  %s1445_s9 = scalar_lea.vmem (!%p1624_p0), [#allocation2], %s834_s7 }
  0x52   : > { %1252 = dma.done.wait (%p1625_p5), %s175_s8, 4096  }
  0x53   : > { %1254 = vsyncadd (%p1625_p5), %s175_s8, 4294963200  ;;  %p1626_p10 = scmp.eq.s32.totalorder %s1329_s16, 0 }
  0x55   : > { %1256 = dma.done.wait (%p1626_p10), [#allocation6], 2048   ;;  %p1627_p2 = pmov %p1626_p10 }
  0x56   : > { %v1085_v0 = vld [vmem:[#allocation5 + $0x40] sm:$0xff]   ;;  %v1087_v2 = vld [vmem:[#allocation5 + $0x48] sm:$0xff]   ;;  %v1089_v4 = vld [vmem:[#allocation5 + $0x50] sm:$0xff]   ;;  %s1496_s4 = scalar_lea.vmem [#allocation7], %s834_s7  ;;  %s893_s25 = sshll.u32 %s1329_s16, 12 }
  0x57   : > { %1258 = vsyncadd (%p1627_p2), [#allocation6], 4294965248  ;;  %v1086_v1 = vld [vmem:[#allocation5] sm:$0xff]   ;;  %894 = vmatprep.subr.bf16.mxu0 %v1085_v0  ;;  %1006 = vmatprep.subr.bf16.mxu1 %v1085_v0  ;;  %v1088_v3 = vld [vmem:[#allocation5 + $0x8] sm:$0xff]   ;;  %s742_s26 = sshll.u32 %s1496_s4, 4  ;;  %s1559_s11 = scalar_lea.hbm %s1613_s3, %s893_s25  ;;  %s1561_s26 = int_to_ptr.vmem [resolvable:$true] %s742_s26 }
  0x58   : > { %895 = vmatpush3.bf16.msra.mxu0 %v1086_v1  ;;  %1014 = vmatpush3.bf16.msra.mxu1 %v1086_v1  ;;  %v1090_v5 = vld [vmem:[#allocation5 + $0x10] sm:$0xff]   ;;  %v1091_v6 = vld [vmem:[#allocation5 + $0x58] sm:$0xff]   ;;  %v1093_v8 = vld [vmem:[#allocation5 + $0x60] sm:$0xff]   ;;  %s729_s16 = scalar_lea.sflag [#allocation4], %s1439_s6  ;;  %s1207_s27 = scalar_lea.vmem %s1561_s26, 4096 }
  0x59   : > { %896 = vmatprep.subr.bf16.mxu0 %v1087_v2  ;;  %1007 = vmatprep.subr.bf16.mxu1 %v1087_v2  ;;  %v1092_v7 = vld [vmem:[#allocation5 + $0x18] sm:$0xff]   ;;  %v1094_v9 = vld [vmem:[#allocation5 + $0x20] sm:$0xff]   ;;  %v1095_v10 = vld [vmem:[#allocation5 + $0x68] sm:$0xff]   ;;  %p1208_p1 = scmp.ne.s32.totalorder %s1561_s26, %s1207_s27  ;;  %s1285_s28 = smov [#allocation7]  }
  0x5a   : > { %v1103_v11 = vld [vmem:[%s1445_s9 + $0x4] ss:$8 sps:$4 sm:$0xff]   ;;  %v1097_v14 = vld [vmem:[#allocation5 + $0x70] sm:$0xff]   ;;  %v1099_v16 = vld [vmem:[#allocation5 + $0x78] sm:$0xff]   ;;  %s1211_s29 = sshll.u32 %s1285_s28, 4  ;;  %s1212_s29 = int_to_ptr.vmem [resolvable:$false] %s1211_s29 }
  0x5b   : > { %v1106_v12 = vld [vmem:[%s1445_s9 + $0x84] ss:$8 sps:$4 sm:$0xff]   ;;  %567 = vmatprep.mubr.bf16.mxu0 %v1103_v11  ;;  %v1098_v15 = vld [vmem:[#allocation5 + $0x30] sm:$0xff]   ;;  %v1100_v17 = vld [vmem:[#allocation5 + $0x38] sm:$0xff]   ;;  %p1209_p4 = pnand %p1208_p1, %p1391_p12  ;;  %s1213_s23 = scalar_lea.vmem %s1212_s29, 8192 }
  0x5c   : > { %897 = vmatpush3.bf16.msra.mxu0 %v1088_v3  ;;  %1015 = vmatpush3.bf16.msra.mxu1 %v1088_v3  ;;  %v1096_v13 = vld [vmem:[#allocation5 + $0x28] sm:$0xff]   ;;  %v1107_v20 = vld [vmem:[%s1445_s9 + $0x14] ss:$8 sps:$4 sm:$0xff]   ;;  %v1111_v22 = vld [vmem:[%s1445_s9 + $0x10] ss:$8 sps:$4 sm:$0xff]   ;;  %p1214_p8 = scmp.lt.s32.totalorder %s1561_s26, %s1212_s29  ;;  %p1215_p13 = scmp.lt.s32.totalorder %s1213_s23, %s1207_s27 }
  0x5d   : > { %898 = vmatprep.subr.bf16.mxu0 %v1089_v4  ;;  %1008 = vmatprep.subr.bf16.mxu1 %v1089_v4  ;;  %v1101_v18 = vld [vmem:[%s1445_s9] ss:$8 sps:$4 sm:$0xff]   ;;  %v1109_v21 = vld [vmem:[%s1445_s9 + $0x94] ss:$8 sps:$4 sm:$0xff]   ;;  %v1112_v23 = vld [vmem:[%s1445_s9 + $0x90] ss:$8 sps:$4 sm:$0xff]   ;;  %p1210_p6 = pneg %p1209_p4 }
  0x5e   : > { %631 = vmatprep.mubr.bf16.mxu1 %v1106_v12  ;;  %v1104_v19 = vld [vmem:[%s1445_s9 + $0x80] ss:$8 sps:$4 sm:$0xff]   ;;  %v1113_v24 = vld [vmem:[%s1445_s9 + $0x24] ss:$8 sps:$4 sm:$0xff]   ;;  %v1119_v28 = vld [vmem:[%s1445_s9 + $0x34] ss:$8 sps:$4 sm:$0xff]   ;;  %p1216_p3 = por %p1215_p13, %p1214_p8 }
  0x5f   : > { %v1115_v25 = vld [vmem:[%s1445_s9 + $0xa4] ss:$8 sps:$4 sm:$0xff]   ;;  %v1117_v26 = vld [vmem:[%s1445_s9 + $0x20] ss:$8 sps:$4 sm:$0xff]   ;;  %v1121_v29 = vld [vmem:[%s1445_s9 + $0xb4] ss:$8 sps:$4 sm:$0xff]  }
  0x60   : > { %899 = vmatpush3.bf16.msra.mxu0 %v1090_v5  ;;  %1016 = vmatpush3.bf16.msra.mxu1 %v1090_v5  ;;  %v1118_v27 = vld [vmem:[%s1445_s9 + $0xa0] ss:$8 sps:$4 sm:$0xff]   ;;  %v1123_v30 = vld [vmem:[%s1445_s9 + $0x30] ss:$8 sps:$4 sm:$0xff]   ;;  %v1125_v32 = vld [vmem:[%s1445_s9 + $0x44] ss:$8 sps:$4 sm:$0xff]   ;;  %p1217_p7 = pnand %p1216_p3, %p1210_p6 }
  0x61   : > { %900 = vmatprep.subr.bf16.mxu0 %v1091_v6  ;;  %1009 = vmatprep.subr.bf16.mxu1 %v1091_v6  ;;  %v1124_v31 = vld [vmem:[%s1445_s9 + $0xb0] ss:$8 sps:$4 sm:$0xff]   ;;  %v1127_v33 = vld [vmem:[%s1445_s9 + $0xc4] ss:$8 sps:$4 sm:$0xff]   ;;  %v1129_v34 = vld [vmem:[%s1445_s9 + $0x40] ss:$8 sps:$4 sm:$0xff]  }
  0x62   : > { %v1130_v35 = vld [vmem:[%s1445_s9 + $0xc0] ss:$8 sps:$4 sm:$0xff]   ;;  %v1131_v36 = vld [vmem:[%s1445_s9 + $0x54] ss:$8 sps:$4 sm:$0xff]   ;;  %v1135_v38 = vld [vmem:[%s1445_s9 + $0x50] ss:$8 sps:$4 sm:$0xff]  }
  0x63   : > { %v1133_v37 = vld [vmem:[%s1445_s9 + $0xd4] ss:$8 sps:$4 sm:$0xff]   ;;  %v1136_v39 = vld [vmem:[%s1445_s9 + $0xd0] ss:$8 sps:$4 sm:$0xff]   ;;  %v1137_v40 = vld [vmem:[%s1445_s9 + $0x64] ss:$8 sps:$4 sm:$0xff]  }
  0x64   : > { %901 = vmatpush3.bf16.msra.mxu0 %v1092_v7  ;;  %1017 = vmatpush3.bf16.msra.mxu1 %v1092_v7  ;;  %v1139_v41 = vld [vmem:[%s1445_s9 + $0xe4] ss:$8 sps:$4 sm:$0xff]   ;;  %v1141_v42 = vld [vmem:[%s1445_s9 + $0x60] ss:$8 sps:$4 sm:$0xff]   ;;  %v1143_v44 = vld [vmem:[%s1445_s9 + $0x74] ss:$8 sps:$4 sm:$0xff]  }
  0x65   : > { %902 = vmatprep.subr.bf16.mxu0 %v1093_v8  ;;  %1010 = vmatprep.subr.bf16.mxu1 %v1093_v8  ;;  %v1142_v43 = vld [vmem:[%s1445_s9 + $0xe0] ss:$8 sps:$4 sm:$0xff]   ;;  %v1145_v45 = vld [vmem:[%s1445_s9 + $0xf4] ss:$8 sps:$4 sm:$0xff]   ;;  %v1147_v46 = vld [vmem:[%s1445_s9 + $0x70] ss:$8 sps:$4 sm:$0xff]  }
  0x66   : > { %v1148_v47 = vld [vmem:[%s1445_s9 + $0xf0] ss:$8 sps:$4 sm:$0xff]   ;;  %v1490_v50 = vld [vmem:[%s1612_s2] ss:$0 sm:$0xff] }
  0x68   : > { %903 = vmatpush3.bf16.msra.mxu0 %v1094_v9  ;;  %1018 = vmatpush3.bf16.msra.mxu1 %v1094_v9 }
  0x69   : > { %904 = vmatprep.subr.bf16.mxu0 %v1095_v10  ;;  %1011 = vmatprep.subr.bf16.mxu1 %v1095_v10 }
  0x6c   : > { %905 = vmatpush3.bf16.msra.mxu0 %v1096_v13  ;;  %1019 = vmatpush3.bf16.msra.mxu1 %v1096_v13 }
  0x6d   : > { %906 = vmatprep.subr.bf16.mxu0 %v1097_v14  ;;  %1012 = vmatprep.subr.bf16.mxu1 %v1097_v14 }
  0x70   : > { %907 = vmatpush3.bf16.msra.mxu0 %v1098_v15  ;;  %1020 = vmatpush3.bf16.msra.mxu1 %v1098_v15 }
  0x71   : > { %908 = vmatprep.subr.bf16.mxu0 %v1099_v16  ;;  %1013 = vmatprep.subr.bf16.mxu1 %v1099_v16 }
  0x74   : > { %909 = vmatpush3.bf16.msra.mxu0 %v1100_v17  ;;  %1021 = vmatpush3.bf16.msra.mxu1 %v1100_v17 }
  0x77   : > { %568 = vmatmul.mubr.bf16.vlgmr.msra.gmra.mrb[0].mxu0 %v1101_v18  ;;  %632 = vmatmul.mubr.bf16.vlgmr.msra.gmra.mrb[0].mxu1 %v1104_v19 }
  0x78   : > { %575 = vmatprep.mubr.bf16.mxu0 %v1107_v20  ;;  %639 = vmatprep.mubr.bf16.mxu1 %v1109_v21 }
  0x7f   : > { %576 = vmatmul.mubr.bf16.gmra.mrb[4].mxu0 %v1111_v22  ;;  %640 = vmatmul.mubr.bf16.gmra.mrb[4].mxu1 %v1112_v23 }
  0x80   : > { %583 = vmatprep.mubr.bf16.mxu0 %v1113_v24  ;;  %647 = vmatprep.mubr.bf16.mxu1 %v1115_v25 }
  0x87   : > { %584 = vmatmul.mubr.bf16.gmra.mrb[8].mxu0 %v1117_v26  ;;  %648 = vmatmul.mubr.bf16.gmra.mrb[8].mxu1 %v1118_v27 }
  0x88   : > { %591 = vmatprep.mubr.bf16.mxu0 %v1119_v28  ;;  %655 = vmatprep.mubr.bf16.mxu1 %v1121_v29 }
  0x8f   : > { %592 = vmatmul.mubr.bf16.gmra.mrb[12].mxu0 %v1123_v30  ;;  %656 = vmatmul.mubr.bf16.gmra.mrb[12].mxu1 %v1124_v31 }
  0x90   : > { %599 = vmatprep.mubr.bf16.mxu0 %v1125_v32  ;;  %663 = vmatprep.mubr.bf16.mxu1 %v1127_v33 }
  0x97   : > { %600 = vmatmul.mubr.bf16.gmra.mrb[16].mxu0 %v1129_v34  ;;  %664 = vmatmul.mubr.bf16.gmra.mrb[16].mxu1 %v1130_v35 }
  0x98   : > { %607 = vmatprep.mubr.bf16.mxu0 %v1131_v36  ;;  %671 = vmatprep.mubr.bf16.mxu1 %v1133_v37 }
  0x9f   : > { %608 = vmatmul.mubr.bf16.gmra.mrb[20].mxu0 %v1135_v38  ;;  %672 = vmatmul.mubr.bf16.gmra.mrb[20].mxu1 %v1136_v39 }
  0xa0   : > { %615 = vmatprep.mubr.bf16.mxu0 %v1137_v40  ;;  %679 = vmatprep.mubr.bf16.mxu1 %v1139_v41 }
  0xa7   : > { %616 = vmatmul.mubr.bf16.gmra.mrb[24].mxu0 %v1141_v42  ;;  %680 = vmatmul.mubr.bf16.gmra.mrb[24].mxu1 %v1142_v43 }
  0xa8   : > { %623 = vmatprep.mubr.bf16.mxu0 %v1143_v44  ;;  %687 = vmatprep.mubr.bf16.mxu1 %v1145_v45 }
  0xaf   : > { %624 = vmatmul.mubr.bf16.gmra.mrb[28].mxu0 %v1147_v46  ;;  %688 = vmatmul.mubr.bf16.gmra.mrb[28].mxu1 %v1148_v47 }
 0x14a   : > { %v910_v48 = vpop.f32.mrb[0].mxu0  ;;  %v958_v49 = vpop.f32.mrb[0].mxu1 }
 0x14b   : > { %v911_v51 = vpop.f32.mrb[1].mxu0  ;;  %v959_v52 = vpop.f32.mrb[1].mxu1 }
 0x14c   : > { %v912_v53 = vadd.f32 %v911_v51, %v910_v48  ;;  %v960_v54 = vadd.f32 %v959_v52, %v958_v49  ;;  %v913_v55 = vpop.f32.mrb[2].mxu0  ;;  %v961_v56 = vpop.f32.mrb[2].mxu1 }
 0x14d   : > { %v914_v57 = vpop.f32.mrb[3].mxu0  ;;  %v962_v58 = vpop.f32.mrb[3].mxu1 }
 0x14e   : > { %v570_v59 = vadd.f32 %v912_v53, %v1490_v50  ;;  %v634_v60 = vadd.f32 %v960_v54, %v1490_v50  ;;  %v915_v61 = vadd.f32 %v914_v57, %v913_v55  ;;  %v963_v62 = vadd.f32 %v962_v58, %v961_v56 }
 0x150   : > { %696 = vst [vmem:[%s1496_s4] sm:$0xff] %v570_v59  ;;  %712 = vst [vmem:[%s1496_s4 + $0x80] sm:$0xff] %v634_v60  ;;  %v573_v63 = vadd.f32 %v915_v61, %v1490_v50  ;;  %v637_v0 = vadd.f32 %v963_v62, %v1490_v50 }
 0x152   : > { %697 = vst [vmem:[%s1496_s4 + $0x8] sm:$0xff] %v573_v63  ;;  %713 = vst [vmem:[%s1496_s4 + $0x88] sm:$0xff] %v637_v0  ;;  %v916_v1 = vpop.f32.mrb[4].mxu0  ;;  %v964_v2 = vpop.f32.mrb[4].mxu1 }
 0x153   : > { %v917_v3 = vpop.f32.mrb[5].mxu0  ;;  %v965_v4 = vpop.f32.mrb[5].mxu1 }
 0x154   : > { %v918_v5 = vadd.f32 %v917_v3, %v916_v1  ;;  %v966_v6 = vadd.f32 %v965_v4, %v964_v2  ;;  %v919_v7 = vpop.f32.mrb[6].mxu0  ;;  %v967_v8 = vpop.f32.mrb[6].mxu1 }
 0x155   : > { %v920_v9 = vpop.f32.mrb[7].mxu0  ;;  %v968_v10 = vpop.f32.mrb[7].mxu1 }
 0x156   : > { %v578_v11 = vadd.f32 %v918_v5, %v1490_v50  ;;  %v642_v12 = vadd.f32 %v966_v6, %v1490_v50  ;;  %v921_v13 = vadd.f32 %v920_v9, %v919_v7  ;;  %v969_v14 = vadd.f32 %v968_v10, %v967_v8 }
 0x158   : > { %698 = vst [vmem:[%s1496_s4 + $0x10] sm:$0xff] %v578_v11  ;;  %714 = vst [vmem:[%s1496_s4 + $0x90] sm:$0xff] %v642_v12  ;;  %v581_v15 = vadd.f32 %v921_v13, %v1490_v50  ;;  %v645_v16 = vadd.f32 %v969_v14, %v1490_v50 }
 0x15a   : > { %699 = vst [vmem:[%s1496_s4 + $0x18] sm:$0xff] %v581_v15  ;;  %715 = vst [vmem:[%s1496_s4 + $0x98] sm:$0xff] %v645_v16  ;;  %v922_v17 = vpop.f32.mrb[8].mxu0  ;;  %v970_v18 = vpop.f32.mrb[8].mxu1 }
 0x15b   : > { %v923_v19 = vpop.f32.mrb[9].mxu0  ;;  %v971_v20 = vpop.f32.mrb[9].mxu1 }
 0x15c   : > { %v924_v21 = vadd.f32 %v923_v19, %v922_v17  ;;  %v972_v22 = vadd.f32 %v971_v20, %v970_v18  ;;  %v925_v23 = vpop.f32.mrb[10].mxu0  ;;  %v973_v24 = vpop.f32.mrb[10].mxu1 }
 0x15d   : > { %v926_v25 = vpop.f32.mrb[11].mxu0  ;;  %v974_v26 = vpop.f32.mrb[11].mxu1 }
 0x15e   : > { %v586_v27 = vadd.f32 %v924_v21, %v1490_v50  ;;  %v650_v28 = vadd.f32 %v972_v22, %v1490_v50  ;;  %v927_v29 = vadd.f32 %v926_v25, %v925_v23  ;;  %v975_v30 = vadd.f32 %v974_v26, %v973_v24 }
 0x160   : > { %700 = vst [vmem:[%s1496_s4 + $0x20] sm:$0xff] %v586_v27  ;;  %716 = vst [vmem:[%s1496_s4 + $0xa0] sm:$0xff] %v650_v28  ;;  %v589_v31 = vadd.f32 %v927_v29, %v1490_v50  ;;  %v653_v32 = vadd.f32 %v975_v30, %v1490_v50 }
 0x162   : > { %701 = vst [vmem:[%s1496_s4 + $0x28] sm:$0xff] %v589_v31  ;;  %717 = vst [vmem:[%s1496_s4 + $0xa8] sm:$0xff] %v653_v32  ;;  %v928_v33 = vpop.f32.mrb[12].mxu0  ;;  %v976_v34 = vpop.f32.mrb[12].mxu1 }
 0x163   : > { %v929_v35 = vpop.f32.mrb[13].mxu0  ;;  %v977_v36 = vpop.f32.mrb[13].mxu1 }
 0x164   : > { %v930_v37 = vadd.f32 %v929_v35, %v928_v33  ;;  %v978_v38 = vadd.f32 %v977_v36, %v976_v34  ;;  %v931_v39 = vpop.f32.mrb[14].mxu0  ;;  %v979_v40 = vpop.f32.mrb[14].mxu1 }
 0x165   : > { %v932_v41 = vpop.f32.mrb[15].mxu0  ;;  %v980_v42 = vpop.f32.mrb[15].mxu1 }
 0x166   : > { %v594_v43 = vadd.f32 %v930_v37, %v1490_v50  ;;  %v658_v44 = vadd.f32 %v978_v38, %v1490_v50  ;;  %v933_v45 = vadd.f32 %v932_v41, %v931_v39  ;;  %v981_v46 = vadd.f32 %v980_v42, %v979_v40 }
 0x168   : > { %702 = vst [vmem:[%s1496_s4 + $0x30] sm:$0xff] %v594_v43  ;;  %718 = vst [vmem:[%s1496_s4 + $0xb0] sm:$0xff] %v658_v44  ;;  %v597_v47 = vadd.f32 %v933_v45, %v1490_v50  ;;  %v661_v48 = vadd.f32 %v981_v46, %v1490_v50 }
 0x16a   : > { %703 = vst [vmem:[%s1496_s4 + $0x38] sm:$0xff] %v597_v47  ;;  %719 = vst [vmem:[%s1496_s4 + $0xb8] sm:$0xff] %v661_v48  ;;  %v934_v49 = vpop.f32.mrb[16].mxu0  ;;  %v982_v51 = vpop.f32.mrb[16].mxu1 }
 0x16b   : > { %v935_v52 = vpop.f32.mrb[17].mxu0  ;;  %v983_v53 = vpop.f32.mrb[17].mxu1 }
 0x16c   : > { %v936_v54 = vadd.f32 %v935_v52, %v934_v49  ;;  %v984_v55 = vadd.f32 %v983_v53, %v982_v51  ;;  %v937_v56 = vpop.f32.mrb[18].mxu0  ;;  %v985_v57 = vpop.f32.mrb[18].mxu1 }
 0x16d   : > { %v938_v58 = vpop.f32.mrb[19].mxu0  ;;  %v986_v59 = vpop.f32.mrb[19].mxu1 }
 0x16e   : > { %v602_v60 = vadd.f32 %v936_v54, %v1490_v50  ;;  %v666_v61 = vadd.f32 %v984_v55, %v1490_v50  ;;  %v939_v62 = vadd.f32 %v938_v58, %v937_v56  ;;  %v987_v63 = vadd.f32 %v986_v59, %v985_v57 }
 0x170   : > { %704 = vst [vmem:[%s1496_s4 + $0x40] sm:$0xff] %v602_v60  ;;  %720 = vst [vmem:[%s1496_s4 + $0xc0] sm:$0xff] %v666_v61  ;;  %v605_v0 = vadd.f32 %v939_v62, %v1490_v50  ;;  %v669_v1 = vadd.f32 %v987_v63, %v1490_v50 }
 0x172   : > { %705 = vst [vmem:[%s1496_s4 + $0x48] sm:$0xff] %v605_v0  ;;  %721 = vst [vmem:[%s1496_s4 + $0xc8] sm:$0xff] %v669_v1  ;;  %v940_v2 = vpop.f32.mrb[20].mxu0  ;;  %v988_v3 = vpop.f32.mrb[20].mxu1 }
 0x173   : > { %v941_v4 = vpop.f32.mrb[21].mxu0  ;;  %v989_v5 = vpop.f32.mrb[21].mxu1 }
 0x174   : > { %v942_v6 = vadd.f32 %v941_v4, %v940_v2  ;;  %v990_v7 = vadd.f32 %v989_v5, %v988_v3  ;;  %v943_v8 = vpop.f32.mrb[22].mxu0  ;;  %v991_v9 = vpop.f32.mrb[22].mxu1 }
 0x175   : > { %v944_v10 = vpop.f32.mrb[23].mxu0  ;;  %v992_v11 = vpop.f32.mrb[23].mxu1 }
 0x176   : > { %v610_v12 = vadd.f32 %v942_v6, %v1490_v50  ;;  %v674_v13 = vadd.f32 %v990_v7, %v1490_v50  ;;  %v945_v14 = vadd.f32 %v944_v10, %v943_v8  ;;  %v993_v15 = vadd.f32 %v992_v11, %v991_v9 }
 0x178   : > { %706 = vst [vmem:[%s1496_s4 + $0x50] sm:$0xff] %v610_v12  ;;  %722 = vst [vmem:[%s1496_s4 + $0xd0] sm:$0xff] %v674_v13  ;;  %v613_v16 = vadd.f32 %v945_v14, %v1490_v50  ;;  %v677_v17 = vadd.f32 %v993_v15, %v1490_v50 }
 0x17a   : > { %707 = vst [vmem:[%s1496_s4 + $0x58] sm:$0xff] %v613_v16  ;;  %723 = vst [vmem:[%s1496_s4 + $0xd8] sm:$0xff] %v677_v17  ;;  %v946_v18 = vpop.f32.mrb[24].mxu0  ;;  %v994_v19 = vpop.f32.mrb[24].mxu1 }
 0x17b   : > { %v947_v20 = vpop.f32.mrb[25].mxu0  ;;  %v995_v21 = vpop.f32.mrb[25].mxu1 }
 0x17c   : > { %v948_v22 = vadd.f32 %v947_v20, %v946_v18  ;;  %v996_v23 = vadd.f32 %v995_v21, %v994_v19  ;;  %v949_v24 = vpop.f32.mrb[26].mxu0  ;;  %v997_v25 = vpop.f32.mrb[26].mxu1 }
 0x17d   : > { %v950_v26 = vpop.f32.mrb[27].mxu0  ;;  %v998_v27 = vpop.f32.mrb[27].mxu1 }
 0x17e   : > { %v618_v28 = vadd.f32 %v948_v22, %v1490_v50  ;;  %v682_v29 = vadd.f32 %v996_v23, %v1490_v50  ;;  %v951_v30 = vadd.f32 %v950_v26, %v949_v24  ;;  %v999_v31 = vadd.f32 %v998_v27, %v997_v25 }
 0x180   : > { %708 = vst [vmem:[%s1496_s4 + $0x60] sm:$0xff] %v618_v28  ;;  %724 = vst [vmem:[%s1496_s4 + $0xe0] sm:$0xff] %v682_v29  ;;  %v621_v32 = vadd.f32 %v951_v30, %v1490_v50  ;;  %v685_v33 = vadd.f32 %v999_v31, %v1490_v50 }
 0x182   : > { %709 = vst [vmem:[%s1496_s4 + $0x68] sm:$0xff] %v621_v32  ;;  %725 = vst [vmem:[%s1496_s4 + $0xe8] sm:$0xff] %v685_v33  ;;  %v952_v34 = vpop.f32.mrb[28].mxu0  ;;  %v1000_v35 = vpop.f32.mrb[28].mxu1 }
 0x183   : > { %v953_v36 = vpop.f32.mrb[29].mxu0  ;;  %v1001_v37 = vpop.f32.mrb[29].mxu1 }
 0x184   : > { %v954_v38 = vadd.f32 %v953_v36, %v952_v34  ;;  %v1002_v39 = vadd.f32 %v1001_v37, %v1000_v35  ;;  %v955_v40 = vpop.f32.mrb[30].mxu0  ;;  %v1003_v41 = vpop.f32.mrb[30].mxu1 }
 0x185   : > { %v956_v42 = vpop.f32.mrb[31].mxu0  ;;  %v1004_v43 = vpop.f32.mrb[31].mxu1 }
 0x186   : > { %v626_v44 = vadd.f32 %v954_v38, %v1490_v50  ;;  %v690_v45 = vadd.f32 %v1002_v39, %v1490_v50  ;;  %v957_v46 = vadd.f32 %v956_v42, %v955_v40  ;;  %v1005_v47 = vadd.f32 %v1004_v43, %v1003_v41 }
 0x188   : > { %710 = vst [vmem:[%s1496_s4 + $0x70] sm:$0xff] %v626_v44  ;;  %726 = vst [vmem:[%s1496_s4 + $0xf0] sm:$0xff] %v690_v45  ;;  %v629_v48 = vadd.f32 %v957_v46, %v1490_v50  ;;  %v693_v49 = vadd.f32 %v1005_v47, %v1490_v50 }
 0x18a   : > { %711 = vst [vmem:[%s1496_s4 + $0x78] sm:$0xff] %v629_v48  ;;  %727 = vst [vmem:[%s1496_s4 + $0xf8] sm:$0xff] %v693_v49 }
 0x18b   : > { %1220 = shalt.err (!%p1217_p7)
}
 0x18c   : > { %s1221_s30 = scalar_lea.hbm %s1559_s11, 4096  ;;  %s1225_s8 = scalar_lea.hbm %s1613_s3, 32768 }
 0x18d   : > { %p1222_p9 = scmp.ne.s32.totalorder %s1559_s11, %s1221_s30  ;;  %p1226_p5 = scmp.lt.u32.totalorder %s1559_s11, %s1613_s3 }
 0x18e   : > { %p1227_p10 = scmp.lt.u32.totalorder %s1225_s8, %s1221_s30  ;;  %p1229_p1 = scmp.lt.u32.totalorder %s1221_s30, %s1559_s11 }
 0x18f   : > { %p1223_p11 = pnand %p1222_p9, %p1391_p12 }
 0x190   : > { %p1228_p2 = por %p1227_p10, %p1226_p5 }
 0x191   : > { %p1224_p0 = pneg %p1223_p11 }
 0x192   : > { %p1230_p4 = por %p1229_p1, %p1228_p2 }
 0x194   : > { %p1231_p6 = pnand %p1230_p4, %p1224_p0 }
 0x196   : > { %1234 = shalt.err (!%p1231_p6)
}
 0x197   : > { %s1286_s20 = smov 128   ;;  %s1287_s4 = smov 8  }
 0x198   : > { %1028 = dma.vmem_to_hbm [thread:$0]  (%p1391_p12), %s1561_s26, 4096, %s1559_s11, %s729_s16, %s1286_s20, %s1286_s20, %s1287_s4  }
 0x199 PF: > { %p1045_p8 = scmp.ge.s32.totalorder %s1277_s15, 2  ;;  %s757_s25 = sand.u32 1, %s1265_s12  }
 0x19a   : > { %p1628_p13 = scmp.ne.s32.totalorder %s1618_s19, 0  ;;  %s758_s5 = scalar_lea.sflag [#allocation4], %s757_s25 }
 0x19c   : > { %p1039_p3 = pnand %p1045_p8, %p1628_p13 }
 0x19e   : > { %1260 = dma.done.wait (!%p1039_p3), %s758_s5, 4096  }
 0x19f   : > { %1262 = vsyncadd (!%p1039_p3), %s758_s5, 4294963200  ;;  %p17_p7 = scmp.ge.s32.totalorder %s1361_s24, 10   ;;  %s1629_s12 = smov %s1269_s13 }
 0x1a0   : > { %s1630_s13 = smov %s1273_s14  ;;  %s1631_s14 = smov %s1387_s17 }
 0x1a1   : > { %s1632_s15 = smov %s1361_s24  ;;  %19 = sbr.rel (!%p17_p7) target bundleno = 6 (0x6), region = 81 }
 0x1a8   :  { %763 = vsyncpa [#allocation3], 1 }
 0x1a9   :  { %765 = vsyncpa [#allocation3 + $0x1], 1 }
 0x1aa   :  { %766 = vsyncpa [#allocation6], 1 }
 0x1ab   :  { %767 = vsyncpa [#allocation4], 1 }
 0x1ac   :  { %769 = vsyncpa [#allocation4 + $0x1], 1 }

</bundles_post_ra>
